<compile_context>
chip_gen: v5e
topology: v5e:2x2
jax: 0.10.0
libtpu: 0.0.40
codegen_flags: <defaults>
</compile_context>

<pallas_src>
import jax
import jax.numpy as jnp
from jax import lax
from jax.experimental import pallas as pl
from jax.experimental.pallas import tpu as pltpu


def lstm_classifier_kernel(gx_ref, whh_ref, wd_ref, bd_ref, out_ref):
    """LSTM recurrence (input projection precomputed) + dense + softmax.

    gx_ref : [T, TB, 4H]  precomputed x@W_ih + (b_ih + b_hh), gate order i,f,g,o
    whh_ref: [H, 4H]      recurrent weights, pre-transposed
    wd_ref : [H, C]       dense weights, pre-transposed
    bd_ref : [1, C]       dense bias
    out_ref: [TB, C]      softmax probabilities
    """
    T, TB, _ = gx_ref.shape
    H = whh_ref.shape[0]

    # Hoist the recurrent-weight load out of the loop (single vld, reused).
    whh = whh_ref[...]

    def step(t, carry):
        h, c = carry
        # Only the h @ W_hh matmul remains on the serial critical path; the
        # per-step input contribution is a single VMEM load (independent of h).
        gates = gx_ref[t] + jnp.dot(h, whh, preferred_element_type=jnp.float32)
        # Full 128-lane EUP passes; per-gate lane slices afterwards.
        sig = jax.nn.sigmoid(gates)   # i, f, o live here
        tnh = jnp.tanh(gates)         # g lives here
        i_g = sig[:, 0 * H:1 * H]
        f_g = sig[:, 1 * H:2 * H]
        g_g = tnh[:, 2 * H:3 * H]
        o_g = sig[:, 3 * H:4 * H]
        c_new = f_g * c + i_g * g_g
        h_new = o_g * jnp.tanh(c_new)
        return h_new, c_new

    h0 = jnp.zeros((TB, H), jnp.float32)
    c0 = jnp.zeros((TB, H), jnp.float32)
    # State stays in registers; fully unrolled so the LLO scheduler can
    # interleave EUP/VPU/MXU work of adjacent timesteps.
    h, _ = lax.fori_loop(0, T, step, (h0, c0), unroll=True)

    # Dense + softmax over the class dim (matches F.softmax(dense_out, dim=1)).
    logits = (jnp.dot(h, wd_ref[...], preferred_element_type=jnp.float32)
              + bd_ref[...])                              # [TB, C]
    m = jnp.max(logits, axis=1, keepdims=True)
    e = jnp.exp(logits - m)
    denom = jnp.sum(e, axis=1, keepdims=True)
    out_ref[...] = e * pl.reciprocal(denom, approx=True)


def face_classifier_forward(x, params):
    """x: [B, T, I] float32 (batch_first, like PyTorch). Returns probs [B, C]."""
    B, T, I = x.shape
    w_ih = params["w_ih"]      # [4H, I]
    w_hh = params["w_hh"]      # [4H, H]
    b_ih = params["b_ih"]      # [4H]
    b_hh = params["b_hh"]      # [4H]
    w_d = params["w_dense"]    # [C, H]
    b_d = params["b_dense"]    # [C]
    H = w_hh.shape[1]
    C = w_d.shape[0]

    # Layout plumbing in plain JAX.
    x_tmaj = jnp.transpose(x, (1, 0, 2)).astype(jnp.float32)      # [T, B, I]
    wih_t = jnp.asarray(w_ih.T, jnp.float32)                      # [I, 4H]
    whh_t = jnp.asarray(w_hh.T, jnp.float32)                      # [H, 4H]
    bias = jnp.asarray((b_ih + b_hh).reshape(1, 1, 4 * H), jnp.float32)
    wd_t = jnp.asarray(w_d.T, jnp.float32)                        # [H, C]
    bd = jnp.asarray(b_d.reshape(1, C), jnp.float32)

    # Hoisted input projection + bias: ONE (T*B, I) @ (I, 4H) matmul outside
    # the serial recurrence (per perf review). Gate order stays (i, f, g, o).
    gates_x = jnp.einsum("tbi,ih->tbh", x_tmaj, wih_t) + bias      # [T, B, 4H]

    # Batch tiling: whole batch when it isn't sublane-aligned (toy case);
    # otherwise blocks of up to 64 rows so real batches spread across a
    # "parallel" grid axis (2nd TensorCore on v7x, free on v5e/v6e).
    if B % 8 == 0:
        TB = min(B, 64)
        while B % TB:
            TB -= 8
    else:
        TB = B
    grid = (B // TB,)

    # NOTE: for very large T / B, gates_x should be streamed over T via an
    # extra grid axis (VMEM is 64 MiB on v7x); unnecessary at these sizes.
    out = pl.pallas_call(
        lstm_classifier_kernel,
        out_shape=jax.ShapeDtypeStruct((B, C), jnp.float32),
        grid=grid,
        in_specs=[
            pl.BlockSpec((T, TB, 4 * H), lambda b: (0, b, 0)),
            pl.BlockSpec((H, 4 * H), lambda b: (0, 0)),
            pl.BlockSpec((H, C), lambda b: (0, 0)),
            pl.BlockSpec((1, C), lambda b: (0, 0)),
        ],
        # C=3-lane output -> masked store; accepted (tiny tensor).
        out_specs=pl.BlockSpec((TB, C), lambda b: (b, 0)),
        compiler_params=pltpu.CompilerParams(
            dimension_semantics=("parallel",)),
    )(gates_x, whh_t, wd_t, bd)
    return out


def _reference_forward(x, params):
    """Pure-JAX reference replicating nn.LSTM(batch_first) + Linear + softmax."""
    w_ih, w_hh = params["w_ih"], params["w_hh"]
    b_ih, b_hh = params["b_ih"], params["b_hh"]
    w_d, b_d = params["w_dense"], params["b_dense"]
    B, T, I = x.shape
    H = w_hh.shape[1]
    h = jnp.zeros((B, H), jnp.float32)
    c = jnp.zeros((B, H), jnp.float32)
    for t in range(T):
        gates = x[:, t, :] @ w_ih.T + b_ih + h @ w_hh.T + b_hh
        i_g = jax.nn.sigmoid(gates[:, 0 * H:1 * H])
        f_g = jax.nn.sigmoid(gates[:, 1 * H:2 * H])
        g_g = jnp.tanh(gates[:, 2 * H:3 * H])
        o_g = jax.nn.sigmoid(gates[:, 3 * H:4 * H])
        c = f_g * c + i_g * g_g
        h = o_g * jnp.tanh(c)
    logits = h @ w_d.T + b_d
    return jax.nn.softmax(logits, axis=1)


if __name__ == "__main__":
    # Small shapes implied by the module: seq-of-features -> LSTM -> 3 classes.
    B, T, I, H, C = 2, 8, 16, 32, 3

    key = jax.random.PRNGKey(0)
    k = 1.0 / jnp.sqrt(jnp.float32(H))
    keys = jax.random.split(key, 7)
    params = {
        "w_ih": jax.random.uniform(keys[0], (4 * H, I), jnp.float32, -k, k),
        "w_hh": jax.random.uniform(keys[1], (4 * H, H), jnp.float32, -k, k),
        "b_ih": jax.random.uniform(keys[2], (4 * H,), jnp.float32, -k, k),
        "b_hh": jax.random.uniform(keys[3], (4 * H,), jnp.float32, -k, k),
        "w_dense": jax.random.uniform(keys[4], (C, H), jnp.float32, -k, k),
        "b_dense": jax.random.uniform(keys[5], (C,), jnp.float32, -k, k),
    }
    x = jax.random.normal(keys[6], (B, T, I), jnp.float32)

    probs = jax.block_until_ready(face_classifier_forward(x, params))
    ref = _reference_forward(x, params)

    assert probs.shape == (B, C)
    # Tolerance accounts for the approx (EUP) reciprocal in the softmax denom.
    assert jnp.allclose(probs, ref, atol=5e-3), (probs, ref)
    assert jnp.allclose(jnp.sum(probs, axis=1), 1.0, atol=5e-3)

    print("KERNEL_OK")
</pallas_src>

<mosaic_0001>
module attributes {stable_mosaic.version = 11 : i64} {
  func.func @lstm_classifier_kernel(%arg0: i32, %arg1: memref<8x2x128xf32, #tpu.memory_space<vmem>>, %arg2: memref<32x128xf32, #tpu.memory_space<vmem>>, %arg3: memref<32x3xf32, #tpu.memory_space<vmem>>, %arg4: memref<1x3xf32, #tpu.memory_space<vmem>>, %arg5: memref<2x3xf32, #tpu.memory_space<vmem>>) attributes {dimension_semantics = [#tpu.dimension_semantics<parallel>], iteration_bounds = array<i64: 1>, scalar_prefetch = 0 : i64, scratch_operands = 0 : i64, tpu.core_type = #tpu.core_type<tc>, window_params = [{transform_indices = @transform_0, window_bounds = array<i64: 8, 2, 128>}, {pipeline_mode = #tpu.pipeline_mode<synchronous>, transform_indices = @transform_1, window_bounds = array<i64: 32, 128>}, {pipeline_mode = #tpu.pipeline_mode<synchronous>, transform_indices = @transform_2, window_bounds = array<i64: 32, 3>}, {pipeline_mode = #tpu.pipeline_mode<synchronous>, transform_indices = @transform_3, window_bounds = array<i64: 1, 3>}, {transform_indices = @transform_4, window_bounds = array<i64: 2, 3>}]} {
    %c0 = arith.constant 0 : index
    %c0_0 = arith.constant 0 : index
    %0 = vector.load %arg2[%c0, %c0_0] : memref<32x128xf32, #tpu.memory_space<vmem>>, vector<32x128xf32>
    %cst = arith.constant 0.000000e+00 : f32
    %1 = vector.broadcast %cst : f32 to vector<2x32xf32>
    %cst_1 = arith.constant 0.000000e+00 : f32
    %2 = vector.broadcast %cst_1 : f32 to vector<2x32xf32>
    %c0_i32 = arith.constant 0 : i32
    %3 = arith.index_cast %c0_i32 : i32 to index
    %c0_2 = arith.constant 0 : index
    %c0_3 = arith.constant 0 : index
    %4 = vector.load %arg1[%3, %c0_2, %c0_3] : memref<8x2x128xf32, #tpu.memory_space<vmem>>, vector<1x2x128xf32>
    %5 = vector.shape_cast %4 : vector<1x2x128xf32> to vector<2x128xf32>
    %cst_4 = arith.constant dense<0.000000e+00> : vector<2x128xf32>
    %6 = tpu.matmul %1, %0, %cst_4 {dimension_numbers = #tpu.dot_dimension_numbers<[1], [0], [0], [1], [0, 0, 1, 1], [], []>} : vector<2x32xf32>, vector<32x128xf32>, vector<2x128xf32> -> vector<2x128xf32>
    %7 = arith.addf %5, %6 : vector<2x128xf32>
    %8 = arith.negf %7 : vector<2x128xf32>
    %9 = math.exp %8 : vector<2x128xf32>
    %cst_5 = arith.constant 1.000000e+00 : f32
    %10 = vector.broadcast %cst_5 : f32 to vector<2x128xf32>
    %11 = arith.addf %10, %9 : vector<2x128xf32>
    %12 = arith.divf %10, %11 : vector<2x128xf32>
    %13 = math.tanh %7 : vector<2x128xf32>
    %14 = vector.extract_strided_slice %12 {offsets = [0, 0], sizes = [2, 32], strides = [1, 1]} : vector<2x128xf32> to vector<2x32xf32>
    %15 = vector.extract_strided_slice %12 {offsets = [0, 32], sizes = [2, 32], strides = [1, 1]} : vector<2x128xf32> to vector<2x32xf32>
    %16 = vector.extract_strided_slice %13 {offsets = [0, 64], sizes = [2, 32], strides = [1, 1]} : vector<2x128xf32> to vector<2x32xf32>
    %17 = vector.extract_strided_slice %12 {offsets = [0, 96], sizes = [2, 32], strides = [1, 1]} : vector<2x128xf32> to vector<2x32xf32>
    %18 = arith.mulf %15, %2 : vector<2x32xf32>
    %19 = arith.mulf %14, %16 : vector<2x32xf32>
    %20 = arith.addf %18, %19 : vector<2x32xf32>
    %21 = math.tanh %20 : vector<2x32xf32>
    %22 = arith.mulf %17, %21 : vector<2x32xf32>
    %c1_i32 = arith.constant 1 : i32
    %23 = arith.index_cast %c1_i32 : i32 to index
    %c0_6 = arith.constant 0 : index
    %c0_7 = arith.constant 0 : index
    %24 = vector.load %arg1[%23, %c0_6, %c0_7] : memref<8x2x128xf32, #tpu.memory_space<vmem>>, vector<1x2x128xf32>
    %25 = vector.shape_cast %24 : vector<1x2x128xf32> to vector<2x128xf32>
    %cst_8 = arith.constant dense<0.000000e+00> : vector<2x128xf32>
    %26 = tpu.matmul %22, %0, %cst_8 {dimension_numbers = #tpu.dot_dimension_numbers<[1], [0], [0], [1], [0, 0, 1, 1], [], []>} : vector<2x32xf32>, vector<32x128xf32>, vector<2x128xf32> -> vector<2x128xf32>
    %27 = arith.addf %25, %26 : vector<2x128xf32>
    %28 = arith.negf %27 : vector<2x128xf32>
    %29 = math.exp %28 : vector<2x128xf32>
    %cst_9 = arith.constant 1.000000e+00 : f32
    %30 = vector.broadcast %cst_9 : f32 to vector<2x128xf32>
    %31 = arith.addf %30, %29 : vector<2x128xf32>
    %32 = arith.divf %30, %31 : vector<2x128xf32>
    %33 = math.tanh %27 : vector<2x128xf32>
    %34 = vector.extract_strided_slice %32 {offsets = [0, 0], sizes = [2, 32], strides = [1, 1]} : vector<2x128xf32> to vector<2x32xf32>
    %35 = vector.extract_strided_slice %32 {offsets = [0, 32], sizes = [2, 32], strides = [1, 1]} : vector<2x128xf32> to vector<2x32xf32>
    %36 = vector.extract_strided_slice %33 {offsets = [0, 64], sizes = [2, 32], strides = [1, 1]} : vector<2x128xf32> to vector<2x32xf32>
    %37 = vector.extract_strided_slice %32 {offsets = [0, 96], sizes = [2, 32], strides = [1, 1]} : vector<2x128xf32> to vector<2x32xf32>
    %38 = arith.mulf %35, %20 : vector<2x32xf32>
    %39 = arith.mulf %34, %36 : vector<2x32xf32>
    %40 = arith.addf %38, %39 : vector<2x32xf32>
    %41 = math.tanh %40 : vector<2x32xf32>
    %42 = arith.mulf %37, %41 : vector<2x32xf32>
    %c2_i32 = arith.constant 2 : i32
    %43 = arith.index_cast %c2_i32 : i32 to index
    %c0_10 = arith.constant 0 : index
    %c0_11 = arith.constant 0 : index
    %44 = vector.load %arg1[%43, %c0_10, %c0_11] : memref<8x2x128xf32, #tpu.memory_space<vmem>>, vector<1x2x128xf32>
    %45 = vector.shape_cast %44 : vector<1x2x128xf32> to vector<2x128xf32>
    %cst_12 = arith.constant dense<0.000000e+00> : vector<2x128xf32>
    %46 = tpu.matmul %42, %0, %cst_12 {dimension_numbers = #tpu.dot_dimension_numbers<[1], [0], [0], [1], [0, 0, 1, 1], [], []>} : vector<2x32xf32>, vector<32x128xf32>, vector<2x128xf32> -> vector<2x128xf32>
    %47 = arith.addf %45, %46 : vector<2x128xf32>
    %48 = arith.negf %47 : vector<2x128xf32>
    %49 = math.exp %48 : vector<2x128xf32>
    %cst_13 = arith.constant 1.000000e+00 : f32
    %50 = vector.broadcast %cst_13 : f32 to vector<2x128xf32>
    %51 = arith.addf %50, %49 : vector<2x128xf32>
    %52 = arith.divf %50, %51 : vector<2x128xf32>
    %53 = math.tanh %47 : vector<2x128xf32>
    %54 = vector.extract_strided_slice %52 {offsets = [0, 0], sizes = [2, 32], strides = [1, 1]} : vector<2x128xf32> to vector<2x32xf32>
    %55 = vector.extract_strided_slice %52 {offsets = [0, 32], sizes = [2, 32], strides = [1, 1]} : vector<2x128xf32> to vector<2x32xf32>
    %56 = vector.extract_strided_slice %53 {offsets = [0, 64], sizes = [2, 32], strides = [1, 1]} : vector<2x128xf32> to vector<2x32xf32>
    %57 = vector.extract_strided_slice %52 {offsets = [0, 96], sizes = [2, 32], strides = [1, 1]} : vector<2x128xf32> to vector<2x32xf32>
    %58 = arith.mulf %55, %40 : vector<2x32xf32>
    %59 = arith.mulf %54, %56 : vector<2x32xf32>
    %60 = arith.addf %58, %59 : vector<2x32xf32>
    %61 = math.tanh %60 : vector<2x32xf32>
    %62 = arith.mulf %57, %61 : vector<2x32xf32>
    %c3_i32 = arith.constant 3 : i32
    %63 = arith.index_cast %c3_i32 : i32 to index
    %c0_14 = arith.constant 0 : index
    %c0_15 = arith.constant 0 : index
    %64 = vector.load %arg1[%63, %c0_14, %c0_15] : memref<8x2x128xf32, #tpu.memory_space<vmem>>, vector<1x2x128xf32>
    %65 = vector.shape_cast %64 : vector<1x2x128xf32> to vector<2x128xf32>
    %cst_16 = arith.constant dense<0.000000e+00> : vector<2x128xf32>
    %66 = tpu.matmul %62, %0, %cst_16 {dimension_numbers = #tpu.dot_dimension_numbers<[1], [0], [0], [1], [0, 0, 1, 1], [], []>} : vector<2x32xf32>, vector<32x128xf32>, vector<2x128xf32> -> vector<2x128xf32>
    %67 = arith.addf %65, %66 : vector<2x128xf32>
    %68 = arith.negf %67 : vector<2x128xf32>
    %69 = math.exp %68 : vector<2x128xf32>
    %cst_17 = arith.constant 1.000000e+00 : f32
    %70 = vector.broadcast %cst_17 : f32 to vector<2x128xf32>
    %71 = arith.addf %70, %69 : vector<2x128xf32>
    %72 = arith.divf %70, %71 : vector<2x128xf32>
    %73 = math.tanh %67 : vector<2x128xf32>
    %74 = vector.extract_strided_slice %72 {offsets = [0, 0], sizes = [2, 32], strides = [1, 1]} : vector<2x128xf32> to vector<2x32xf32>
    %75 = vector.extract_strided_slice %72 {offsets = [0, 32], sizes = [2, 32], strides = [1, 1]} : vector<2x128xf32> to vector<2x32xf32>
    %76 = vector.extract_strided_slice %73 {offsets = [0, 64], sizes = [2, 32], strides = [1, 1]} : vector<2x128xf32> to vector<2x32xf32>
    %77 = vector.extract_strided_slice %72 {offsets = [0, 96], sizes = [2, 32], strides = [1, 1]} : vector<2x128xf32> to vector<2x32xf32>
    %78 = arith.mulf %75, %60 : vector<2x32xf32>
    %79 = arith.mulf %74, %76 : vector<2x32xf32>
    %80 = arith.addf %78, %79 : vector<2x32xf32>
    %81 = math.tanh %80 : vector<2x32xf32>
    %82 = arith.mulf %77, %81 : vector<2x32xf32>
    %c4_i32 = arith.constant 4 : i32
    %83 = arith.index_cast %c4_i32 : i32 to index
    %c0_18 = arith.constant 0 : index
    %c0_19 = arith.constant 0 : index
    %84 = vector.load %arg1[%83, %c0_18, %c0_19] : memref<8x2x128xf32, #tpu.memory_space<vmem>>, vector<1x2x128xf32>
    %85 = vector.shape_cast %84 : vector<1x2x128xf32> to vector<2x128xf32>
    %cst_20 = arith.constant dense<0.000000e+00> : vector<2x128xf32>
    %86 = tpu.matmul %82, %0, %cst_20 {dimension_numbers = #tpu.dot_dimension_numbers<[1], [0], [0], [1], [0, 0, 1, 1], [], []>} : vector<2x32xf32>, vector<32x128xf32>, vector<2x128xf32> -> vector<2x128xf32>
    %87 = arith.addf %85, %86 : vector<2x128xf32>
    %88 = arith.negf %87 : vector<2x128xf32>
    %89 = math.exp %88 : vector<2x128xf32>
    %cst_21 = arith.constant 1.000000e+00 : f32
    %90 = vector.broadcast %cst_21 : f32 to vector<2x128xf32>
    %91 = arith.addf %90, %89 : vector<2x128xf32>
    %92 = arith.divf %90, %91 : vector<2x128xf32>
    %93 = math.tanh %87 : vector<2x128xf32>
    %94 = vector.extract_strided_slice %92 {offsets = [0, 0], sizes = [2, 32], strides = [1, 1]} : vector<2x128xf32> to vector<2x32xf32>
    %95 = vector.extract_strided_slice %92 {offsets = [0, 32], sizes = [2, 32], strides = [1, 1]} : vector<2x128xf32> to vector<2x32xf32>
    %96 = vector.extract_strided_slice %93 {offsets = [0, 64], sizes = [2, 32], strides = [1, 1]} : vector<2x128xf32> to vector<2x32xf32>
    %97 = vector.extract_strided_slice %92 {offsets = [0, 96], sizes = [2, 32], strides = [1, 1]} : vector<2x128xf32> to vector<2x32xf32>
    %98 = arith.mulf %95, %80 : vector<2x32xf32>
    %99 = arith.mulf %94, %96 : vector<2x32xf32>
    %100 = arith.addf %98, %99 : vector<2x32xf32>
    %101 = math.tanh %100 : vector<2x32xf32>
    %102 = arith.mulf %97, %101 : vector<2x32xf32>
    %c5_i32 = arith.constant 5 : i32
    %103 = arith.index_cast %c5_i32 : i32 to index
    %c0_22 = arith.constant 0 : index
    %c0_23 = arith.constant 0 : index
    %104 = vector.load %arg1[%103, %c0_22, %c0_23] : memref<8x2x128xf32, #tpu.memory_space<vmem>>, vector<1x2x128xf32>
    %105 = vector.shape_cast %104 : vector<1x2x128xf32> to vector<2x128xf32>
    %cst_24 = arith.constant dense<0.000000e+00> : vector<2x128xf32>
    %106 = tpu.matmul %102, %0, %cst_24 {dimension_numbers = #tpu.dot_dimension_numbers<[1], [0], [0], [1], [0, 0, 1, 1], [], []>} : vector<2x32xf32>, vector<32x128xf32>, vector<2x128xf32> -> vector<2x128xf32>
    %107 = arith.addf %105, %106 : vector<2x128xf32>
    %108 = arith.negf %107 : vector<2x128xf32>
    %109 = math.exp %108 : vector<2x128xf32>
    %cst_25 = arith.constant 1.000000e+00 : f32
    %110 = vector.broadcast %cst_25 : f32 to vector<2x128xf32>
    %111 = arith.addf %110, %109 : vector<2x128xf32>
    %112 = arith.divf %110, %111 : vector<2x128xf32>
    %113 = math.tanh %107 : vector<2x128xf32>
    %114 = vector.extract_strided_slice %112 {offsets = [0, 0], sizes = [2, 32], strides = [1, 1]} : vector<2x128xf32> to vector<2x32xf32>
    %115 = vector.extract_strided_slice %112 {offsets = [0, 32], sizes = [2, 32], strides = [1, 1]} : vector<2x128xf32> to vector<2x32xf32>
    %116 = vector.extract_strided_slice %113 {offsets = [0, 64], sizes = [2, 32], strides = [1, 1]} : vector<2x128xf32> to vector<2x32xf32>
    %117 = vector.extract_strided_slice %112 {offsets = [0, 96], sizes = [2, 32], strides = [1, 1]} : vector<2x128xf32> to vector<2x32xf32>
    %118 = arith.mulf %115, %100 : vector<2x32xf32>
    %119 = arith.mulf %114, %116 : vector<2x32xf32>
    %120 = arith.addf %118, %119 : vector<2x32xf32>
    %121 = math.tanh %120 : vector<2x32xf32>
    %122 = arith.mulf %117, %121 : vector<2x32xf32>
    %c6_i32 = arith.constant 6 : i32
    %123 = arith.index_cast %c6_i32 : i32 to index
    %c0_26 = arith.constant 0 : index
    %c0_27 = arith.constant 0 : index
    %124 = vector.load %arg1[%123, %c0_26, %c0_27] : memref<8x2x128xf32, #tpu.memory_space<vmem>>, vector<1x2x128xf32>
    %125 = vector.shape_cast %124 : vector<1x2x128xf32> to vector<2x128xf32>
    %cst_28 = arith.constant dense<0.000000e+00> : vector<2x128xf32>
    %126 = tpu.matmul %122, %0, %cst_28 {dimension_numbers = #tpu.dot_dimension_numbers<[1], [0], [0], [1], [0, 0, 1, 1], [], []>} : vector<2x32xf32>, vector<32x128xf32>, vector<2x128xf32> -> vector<2x128xf32>
    %127 = arith.addf %125, %126 : vector<2x128xf32>
    %128 = arith.negf %127 : vector<2x128xf32>
    %129 = math.exp %128 : vector<2x128xf32>
    %cst_29 = arith.constant 1.000000e+00 : f32
    %130 = vector.broadcast %cst_29 : f32 to vector<2x128xf32>
    %131 = arith.addf %130, %129 : vector<2x128xf32>
    %132 = arith.divf %130, %131 : vector<2x128xf32>
    %133 = math.tanh %127 : vector<2x128xf32>
    %134 = vector.extract_strided_slice %132 {offsets = [0, 0], sizes = [2, 32], strides = [1, 1]} : vector<2x128xf32> to vector<2x32xf32>
    %135 = vector.extract_strided_slice %132 {offsets = [0, 32], sizes = [2, 32], strides = [1, 1]} : vector<2x128xf32> to vector<2x32xf32>
    %136 = vector.extract_strided_slice %133 {offsets = [0, 64], sizes = [2, 32], strides = [1, 1]} : vector<2x128xf32> to vector<2x32xf32>
    %137 = vector.extract_strided_slice %132 {offsets = [0, 96], sizes = [2, 32], strides = [1, 1]} : vector<2x128xf32> to vector<2x32xf32>
    %138 = arith.mulf %135, %120 : vector<2x32xf32>
    %139 = arith.mulf %134, %136 : vector<2x32xf32>
    %140 = arith.addf %138, %139 : vector<2x32xf32>
    %141 = math.tanh %140 : vector<2x32xf32>
    %142 = arith.mulf %137, %141 : vector<2x32xf32>
    %c7_i32 = arith.constant 7 : i32
    %143 = arith.index_cast %c7_i32 : i32 to index
    %c0_30 = arith.constant 0 : index
    %c0_31 = arith.constant 0 : index
    %144 = vector.load %arg1[%143, %c0_30, %c0_31] : memref<8x2x128xf32, #tpu.memory_space<vmem>>, vector<1x2x128xf32>
    %145 = vector.shape_cast %144 : vector<1x2x128xf32> to vector<2x128xf32>
    %cst_32 = arith.constant dense<0.000000e+00> : vector<2x128xf32>
    %146 = tpu.matmul %142, %0, %cst_32 {dimension_numbers = #tpu.dot_dimension_numbers<[1], [0], [0], [1], [0, 0, 1, 1], [], []>} : vector<2x32xf32>, vector<32x128xf32>, vector<2x128xf32> -> vector<2x128xf32>
    %147 = arith.addf %145, %146 : vector<2x128xf32>
    %148 = arith.negf %147 : vector<2x128xf32>
    %149 = math.exp %148 : vector<2x128xf32>
    %cst_33 = arith.constant 1.000000e+00 : f32
    %150 = vector.broadcast %cst_33 : f32 to vector<2x128xf32>
    %151 = arith.addf %150, %149 : vector<2x128xf32>
    %152 = arith.divf %150, %151 : vector<2x128xf32>
    %153 = math.tanh %147 : vector<2x128xf32>
    %154 = vector.extract_strided_slice %152 {offsets = [0, 0], sizes = [2, 32], strides = [1, 1]} : vector<2x128xf32> to vector<2x32xf32>
    %155 = vector.extract_strided_slice %152 {offsets = [0, 32], sizes = [2, 32], strides = [1, 1]} : vector<2x128xf32> to vector<2x32xf32>
    %156 = vector.extract_strided_slice %153 {offsets = [0, 64], sizes = [2, 32], strides = [1, 1]} : vector<2x128xf32> to vector<2x32xf32>
    %157 = vector.extract_strided_slice %152 {offsets = [0, 96], sizes = [2, 32], strides = [1, 1]} : vector<2x128xf32> to vector<2x32xf32>
    %158 = arith.mulf %155, %140 : vector<2x32xf32>
    %159 = arith.mulf %154, %156 : vector<2x32xf32>
    %160 = arith.addf %158, %159 : vector<2x32xf32>
    %161 = math.tanh %160 : vector<2x32xf32>
    %162 = arith.mulf %157, %161 : vector<2x32xf32>
    %c8_i32 = arith.constant 8 : i32
    %c0_34 = arith.constant 0 : index
    %c0_35 = arith.constant 0 : index
    %163 = vector.load %arg3[%c0_34, %c0_35] : memref<32x3xf32, #tpu.memory_space<vmem>>, vector<32x3xf32>
    %cst_36 = arith.constant dense<0.000000e+00> : vector<2x3xf32>
    %164 = tpu.matmul %162, %163, %cst_36 {dimension_numbers = #tpu.dot_dimension_numbers<[1], [0], [0], [1], [0, 0, 1, 1], [], []>} : vector<2x32xf32>, vector<32x3xf32>, vector<2x3xf32> -> vector<2x3xf32>
    %c0_37 = arith.constant 0 : index
    %c0_38 = arith.constant 0 : index
    %165 = vector.load %arg4[%c0_37, %c0_38] : memref<1x3xf32, #tpu.memory_space<vmem>>, vector<1x3xf32>
    %166 = vector.broadcast %165 : vector<1x3xf32> to vector<2x3xf32>
    %167 = arith.addf %164, %166 : vector<2x3xf32>
    %cst_39 = arith.constant dense<0xFF800000> : vector<2xf32>
    %168 = vector.multi_reduction <maximumf>, %167, %cst_39 [1] : vector<2x3xf32> to vector<2xf32>
    %169 = vector.shape_cast %168 : vector<2xf32> to vector<2x1xf32>
    %170 = vector.broadcast %169 : vector<2x1xf32> to vector<2x3xf32>
    %171 = arith.subf %167, %170 : vector<2x3xf32>
    %172 = math.exp %171 : vector<2x3xf32>
    %cst_40 = arith.constant dense<0.000000e+00> : vector<2xf32>
    %173 = vector.multi_reduction <add>, %172, %cst_40 [1] : vector<2x3xf32> to vector<2xf32>
    %174 = vector.shape_cast %173 : vector<2xf32> to vector<2x1xf32>
    %175 = tpu.reciprocal %174 {approx = true} : vector<2x1xf32> -> vector<2x1xf32>
    %176 = vector.broadcast %175 : vector<2x1xf32> to vector<2x3xf32>
    %177 = arith.mulf %172, %176 : vector<2x3xf32>
    %c0_41 = arith.constant 0 : index
    %c0_42 = arith.constant 0 : index
    %178 = vector.load %arg5[%c0_41, %c0_42] : memref<2x3xf32, #tpu.memory_space<vmem>>, vector<2x3xf32>
    tpu.vector_store %arg5[%c0_41, %c0_42], %177 {strides = array<i32>} : memref<2x3xf32, #tpu.memory_space<vmem>>, vector<2x3xf32>,
    return
  }
  func.func @transform_0(%arg0: i32) -> (i32, i32, i32) {
    %c0_i32 = arith.constant 0 : i32
    %c0_i32_0 = arith.constant 0 : i32
    %c0_i32_1 = arith.constant 0 : i32
    return %c0_i32, %arg0, %c0_i32_0 : i32, i32, i32
  }
  func.func @transform_1(%arg0: i32) -> (i32, i32) {
    %c0_i32 = arith.constant 0 : i32
    %c0_i32_0 = arith.constant 0 : i32
    %c0_i32_1 = arith.constant 0 : i32
    return %c0_i32, %c0_i32_0 : i32, i32
  }
  func.func @transform_2(%arg0: i32) -> (i32, i32) {
    %c0_i32 = arith.constant 0 : i32
    %c0_i32_0 = arith.constant 0 : i32
    %c0_i32_1 = arith.constant 0 : i32
    return %c0_i32, %c0_i32_0 : i32, i32
  }
  func.func @transform_3(%arg0: i32) -> (i32, i32) {
    %c0_i32 = arith.constant 0 : i32
    %c0_i32_0 = arith.constant 0 : i32
    %c0_i32_1 = arith.constant 0 : i32
    return %c0_i32, %c0_i32_0 : i32, i32
  }
  func.func @transform_4(%arg0: i32) -> (i32, i32) {
    %c0_i32 = arith.constant 0 : i32
    %c0_i32_0 = arith.constant 0 : i32
    return %arg0, %c0_i32 : i32, i32
  }
}

</mosaic_0001>

<bundles_post_ra>
// kernel: tpu_custom_call.1
= control target key start
LH: loop header
LB: loop body
LE: loop exit
PB: predicated region body
PF: predicated region fallthrough
CT: control target
= control target key end

     0   :  { %9 = vsyncpa [#allocation3], 0  ;;  %s871_s0 = inlined_call_operand.hbm [shape: f32[8,2,128], index: 0, kind: input, shape index: {}]   ;;  %s872_s1 = inlined_call_operand.vmem [shape: f32[32,128], index: 1, kind: input, shape index: {}]   ;;  %s873_s2 = inlined_call_operand.vmem [shape: f32[32,3], index: 2, kind: input, shape index: {}]   ;;  %s874_s3 = inlined_call_operand.vmem [shape: f32[1,3], index: 3, kind: input, shape index: {}]   ;;  %s875_s4 = inlined_call_operand.hbm [shape: f32[2,3], index: 4, kind: output, shape index: {}]  }
   0x1   :  { %10 = vsyncpa [#allocation4], 0  ;;  %s15_s17 = sshll.u32 %s871_s0, 4  ;;  %s762_s18 = smov [#allocation2]   ;;  %s16_s17 = int_to_ptr.hbm [resolvable:$true] %s15_s17 }
   0x2   :  { %s17_s19 = sshll.u32 %s762_s18, 4  ;;  %s763_s20 = smov 32   ;;  %s18_s19 = int_to_ptr.vmem [resolvable:$true] %s17_s19 }
   0x3   :  { %s764_s21 = smov 2  }
   0x4   :  { %23 = dma.hbm_to_vmem [thread:$0]  %s16_s17, 256, %s18_s19, [#allocation3], %s763_s20, %s763_s20, %s764_s21  }
   0x5   :  { %758 = dma.done.wait [#allocation3], 256  }
   0x6   :  { %759 = vsyncadd [#allocation3], 4294967040  ;;  %v37_v0 = vld [vmem:[%s872_s1 + $0x18] sm:$0xff]  ;;  %v36_v1 = vld [vmem:[%s872_s1 + $0x10] sm:$0xff]  ;;  %v765_v4 = vmov 0.0   ;;  %vm39_vm4 = vcmask 261120  }
   0x7   :  { %55 = vmatpush.msra.mxu0 %v37_v0  ;;  %120 = vmatpush.msra.mxu1 %v37_v0  ;;  %v35_v2 = vld [vmem:[%s872_s1 + $0x8] sm:$0xff]  ;;  %v34_v3 = vld [vmem:[%s872_s1] sm:$0xff]  ;;  %s766_s1 = smov 64   ;;  %s609_s15 = sshll.u32 %s875_s4, 4  ;;  %s610_s15 = int_to_ptr.hbm [resolvable:$true] %s609_s15 }
   0x8   :  { %185 = vmatpush.msra.mxu2 %v37_v0  ;;  %250 = vmatpush.msra.mxu3 %v37_v0  ;;  %v38_v5 = vld [vmem:[#allocation2] sm:$0x3]  ;;  %v102_v31 = vld [vmem:[#allocation2 + $0x2] sm:$0x3]  ;;  %v167_v57 = vld [vmem:[#allocation2 + $0x4] sm:$0x3] }
   0x9   :  { %56 = vmatpush.msra.mxu0 %v36_v1  ;;  %121 = vmatpush.msra.mxu1 %v36_v1 }
   0xa   :  { %186 = vmatpush.msra.mxu2 %v36_v1  ;;  %251 = vmatpush.msra.mxu3 %v36_v1 }
   0xb   :  { %57 = vmatpush.msra.mxu0 %v35_v2  ;;  %122 = vmatpush.msra.mxu1 %v35_v2 }
   0xc   :  { %187 = vmatpush.msra.mxu2 %v35_v2  ;;  %252 = vmatpush.msra.mxu3 %v35_v2 }
   0xd   :  { %58 = vmatpush.msra.mxu0 %v34_v3  ;;  %123 = vmatpush.msra.mxu1 %v34_v3 }
   0xe   :  { %59 = vmatmul.f32.vlgmr.msra.gmra.mxu0 %v765_v4  ;;  %188 = vmatpush.msra.mxu2 %v34_v3 }
   0xf   :  { %253 = vmatpush.msra.mxu3 %v34_v3  ;;  %315 = vmatpush.msrb.mxu0 %v37_v0 }
  0x10   :  { %380 = vmatpush.msrb.mxu1 %v37_v0  ;;  %445 = vmatpush.msrb.mxu2 %v37_v0 }
  0x11   :  { %316 = vmatpush.msrb.mxu0 %v36_v1  ;;  %510 = vmatpush.msrb.mxu3 %v37_v0 }
  0x12   :  { %381 = vmatpush.msrb.mxu1 %v36_v1  ;;  %446 = vmatpush.msrb.mxu2 %v36_v1 }
  0x13   :  { %317 = vmatpush.msrb.mxu0 %v35_v2  ;;  %511 = vmatpush.msrb.mxu3 %v36_v1 }
  0x14   :  { %382 = vmatpush.msrb.mxu1 %v35_v2  ;;  %447 = vmatpush.msrb.mxu2 %v35_v2 }
  0x15   :  { %318 = vmatpush.msrb.mxu0 %v34_v3  ;;  %512 = vmatpush.msrb.mxu3 %v35_v2 }
  0x16   :  { %383 = vmatpush.msrb.mxu1 %v34_v3  ;;  %448 = vmatpush.msrb.mxu2 %v34_v3 }
  0x17   :  { %513 = vmatpush.msrb.mxu3 %v34_v3 }
  0x8b   :  { %v60_v6 = vpop.f32.mrf.mxu0 }
  0x8c   :  { %v63_v7 = vadd.f32 %v60_v6, %v38_v5 }
  0x8e   :  { %642 = vtanh.f32 %v63_v7  ;;  %v619_v9 = vmul.f32 -1.442695, %v63_v7 }
  0x90   :  { %644 = vpow2.f32 %v619_v9 }
  0x94   :  { %v643_v8 = vpop.eup %642 }
  0x95   :  { %86 = vrot.lane.b32.xlu0 %v643_v8, %s766_s1 }
  0x96   :  { %v645_v10 = vpop.eup %644 }
  0x97   :  { %v67_v11 = vadd.f32 1.0, %v645_v10 }
  0x99   :  { %646 = vrcp.f32 %v67_v11  ;;  %v79_v17 = vand.u32 2147483648, %v67_v11  ;;  %vm73_vm1 = vweird.f32 %v67_v11  ;;  %v77_v18 = vand.u32 2147483647, %v67_v11 }
  0x9b   :  { %v80_v20 = vor.u32 1.1754944e-38, %v79_v17  ;;  %vm78_vm3 = vcmp.eq.f32.partialorder %v77_v18, 8.507059e+37 }
  0x9f   :  { %v647_v12 = vpop.eup %646 }
  0xa0   :  { %v69_v13 = vmul.f32 %v647_v12, %v67_v11  ;;  %vm74_vm0 = vweird.f32 %v647_v12 }
  0xa1   :  { %vm75_vm2 = vmor %vm73_vm1, %vm74_vm0 }
  0xa2   :  { %v70_v14 = vsub.f32 1.0, %v69_v13 }
  0xa4   :  { %v71_v15 = vmul.f32 %v647_v12, %v70_v14 }
  0xa6   :  { %v72_v16 = vadd.f32 %v647_v12, %v71_v15 }
  0xa8   :  { %v76_v19 = vsel %vm75_vm2, %v647_v12, %v72_v16 }
  0xa9   :  { %v81_v22 = vsel %vm78_vm3, %v80_v20, %v76_v19  ;;  %v232_v19 = vld [vmem:[#allocation2 + $0x6] sm:$0x3] }
  0xaa   :  { %v84_v24 = vmul.f32 0.0, %v81_v22 }
 0x107   :  { %v87_v21 = vpop.permute.xlu0 %86 }
 0x108   :  { %v89_v23 = vmul.f32 %v87_v21, %v81_v22 }
 0x10a   :  { %91 = vrot.lane.b32.xlu0 %v89_v23, %s763_s20 }
 0x17c   :  { %v92_v25 = vpop.permute.xlu0 %91 }
 0x17d   :  { %v94_v26 = vadd.f32 %v92_v25, %v84_v24 }
 0x17f   :  { %648 = vtanh.f32 %v94_v26 }
 0x185   :  { %v649_v27 = vpop.eup %648 }
 0x186   :  { %97 = vrot.lane.b32.xlu1 %v649_v27, %s766_s1 }
 0x1f8   :  { %v98_v28 = vpop.permute.xlu1 %97 }
 0x1f9   :  { %v100_v29 = vmul.f32 %v98_v28, %v81_v22 }
 0x1fb   :  { %104 = vrot.lane.b32.xlu1 %v100_v29, %s763_s20 }
 0x26d   :  { %v105_v30 = vpop.permute.xlu1 %104 }
 0x26e   :  { %620 = vmatmul.msk.f32.vlgmr.msra.gmra.mxu1 %vm39_vm4, %v105_v30 }
 0x2eb   :  { %v125_v32 = vpop.f32.mrf.mxu1 }
 0x2ec   :  { %v128_v33 = vadd.f32 %v125_v32, %v102_v31 }
 0x2ee   :  { %650 = vtanh.f32 %v128_v33  ;;  %v621_v35 = vmul.f32 -1.442695, %v128_v33 }
 0x2f0   :  { %652 = vpow2.f32 %v621_v35 }
 0x2f4   :  { %v651_v34 = vpop.eup %650 }
 0x2f5   :  { %151 = vrot.lane.b32.xlu2 %v651_v34, %s766_s1 }
 0x2f6   :  { %v653_v36 = vpop.eup %652 }
 0x2f7   :  { %v132_v37 = vadd.f32 1.0, %v653_v36 }
 0x2f9   :  { %654 = vrcp.f32 %v132_v37  ;;  %v144_v43 = vand.u32 2147483648, %v132_v37  ;;  %vm138_vm6 = vweird.f32 %v132_v37  ;;  %v142_v44 = vand.u32 2147483647, %v132_v37 }
 0x2fb   :  { %v145_v46 = vor.u32 1.1754944e-38, %v144_v43  ;;  %vm143_vm8 = vcmp.eq.f32.partialorder %v142_v44, 8.507059e+37 }
 0x2ff   :  { %v655_v38 = vpop.eup %654 }
 0x300   :  { %v134_v39 = vmul.f32 %v655_v38, %v132_v37  ;;  %vm139_vm5 = vweird.f32 %v655_v38 }
 0x301   :  { %vm140_vm7 = vmor %vm138_vm6, %vm139_vm5 }
 0x302   :  { %v135_v40 = vsub.f32 1.0, %v134_v39 }
 0x304   :  { %v136_v41 = vmul.f32 %v655_v38, %v135_v40 }
 0x306   :  { %v137_v42 = vadd.f32 %v655_v38, %v136_v41 }
 0x308   :  { %v141_v45 = vsel %vm140_vm7, %v655_v38, %v137_v42 }
 0x309   :  { %v146_v48 = vsel %vm143_vm8, %v145_v46, %v141_v45  ;;  %v297_v45 = vld [vmem:[#allocation2 + $0x8] sm:$0x3] }
 0x30a   :  { %v149_v50 = vmul.f32 %v146_v48, %v94_v26 }
 0x34f   :  { %v152_v47 = vpop.permute.xlu2 %151 }
 0x350   :  { %v154_v49 = vmul.f32 %v152_v47, %v146_v48 }
 0x352   :  { %156 = vrot.lane.b32.xlu2 %v154_v49, %s763_s20 }
 0x3ac   :  { %v157_v51 = vpop.permute.xlu2 %156 }
 0x3ad   :  { %v159_v52 = vadd.f32 %v157_v51, %v149_v50 }
 0x3af   :  { %656 = vtanh.f32 %v159_v52 }
 0x3b5   :  { %v657_v53 = vpop.eup %656 }
 0x3b6   :  { %162 = vrot.lane.b32.xlu0 %v657_v53, %s766_s1 }
 0x428   :  { %v163_v54 = vpop.permute.xlu0 %162 }
 0x429   :  { %v165_v55 = vmul.f32 %v163_v54, %v146_v48 }
 0x42b   :  { %169 = vrot.lane.b32.xlu1 %v165_v55, %s763_s20 }
 0x49d   :  { %v170_v56 = vpop.permute.xlu1 %169 }
 0x49e   :  { %622 = vmatmul.msk.f32.vlgmr.msra.gmra.mxu2 %vm39_vm4, %v170_v56 }
 0x521   :  { %v190_v58 = vpop.f32.mrf.mxu2 }
 0x522   :  { %v193_v59 = vadd.f32 %v190_v58, %v167_v57 }
 0x524   :  { %658 = vtanh.f32 %v193_v59  ;;  %v623_v61 = vmul.f32 -1.442695, %v193_v59 }
 0x526   :  { %660 = vpow2.f32 %v623_v61 }
 0x52a   :  { %v659_v60 = vpop.eup %658 }
 0x52b   :  { %216 = vrot.lane.b32.xlu2 %v659_v60, %s766_s1 }
 0x52c   :  { %v661_v62 = vpop.eup %660 }
 0x52d   :  { %v197_v63 = vadd.f32 1.0, %v661_v62 }
 0x52f   :  { %662 = vrcp.f32 %v197_v63  ;;  %v209_v5 = vand.u32 2147483648, %v197_v63  ;;  %vm203_vm10 = vweird.f32 %v197_v63  ;;  %v207_v6 = vand.u32 2147483647, %v197_v63 }
 0x531   :  { %v210_v8 = vor.u32 1.1754944e-38, %v209_v5  ;;  %vm208_vm12 = vcmp.eq.f32.partialorder %v207_v6, 8.507059e+37 }
 0x535   :  { %v663_v0 = vpop.eup %662 }
 0x536   :  { %v199_v1 = vmul.f32 %v663_v0, %v197_v63  ;;  %vm204_vm9 = vweird.f32 %v663_v0 }
 0x537   :  { %vm205_vm11 = vmor %vm203_vm10, %vm204_vm9 }
 0x538   :  { %v200_v2 = vsub.f32 1.0, %v199_v1 }
 0x53a   :  { %v201_v3 = vmul.f32 %v663_v0, %v200_v2 }
 0x53c   :  { %v202_v4 = vadd.f32 %v663_v0, %v201_v3 }
 0x53e   :  { %v206_v7 = vsel %vm205_vm11, %v663_v0, %v202_v4 }
 0x53f   :  { %v211_v10 = vsel %vm208_vm12, %v210_v8, %v206_v7  ;;  %v362_v7 = vld [vmem:[#allocation2 + $0xa] sm:$0x3] }
 0x540   :  { %v214_v12 = vmul.f32 %v211_v10, %v159_v52 }
 0x585   :  { %v217_v9 = vpop.permute.xlu2 %216 }
 0x586   :  { %v219_v11 = vmul.f32 %v217_v9, %v211_v10 }
 0x588   :  { %221 = vrot.lane.b32.xlu0 %v219_v11, %s763_s20 }
 0x5fa   :  { %v222_v13 = vpop.permute.xlu0 %221 }
 0x5fb   :  { %v224_v14 = vadd.f32 %v222_v13, %v214_v12 }
 0x5fd   :  { %664 = vtanh.f32 %v224_v14 }
 0x603   :  { %v665_v15 = vpop.eup %664 }
 0x604   :  { %227 = vrot.lane.b32.xlu1 %v665_v15, %s766_s1 }
 0x676   :  { %v228_v16 = vpop.permute.xlu1 %227 }
 0x677   :  { %v230_v17 = vmul.f32 %v228_v16, %v211_v10 }
 0x679   :  { %234 = vrot.lane.b32.xlu2 %v230_v17, %s763_s20 }
 0x6d3   :  { %v235_v18 = vpop.permute.xlu2 %234 }
 0x6d4   :  { %624 = vmatmul.msk.f32.vlgmr.msra.gmra.mxu3 %vm39_vm4, %v235_v18 }
 0x757   :  { %v255_v20 = vpop.f32.mrf.mxu3 }
 0x758   :  { %v258_v21 = vadd.f32 %v255_v20, %v232_v19 }
 0x75a   :  { %666 = vtanh.f32 %v258_v21  ;;  %v625_v23 = vmul.f32 -1.442695, %v258_v21 }
 0x75c   :  { %668 = vpow2.f32 %v625_v23 }
 0x760   :  { %v667_v22 = vpop.eup %666 }
 0x761   :  { %281 = vrot.lane.b32.xlu0 %v667_v22, %s766_s1 }
 0x762   :  { %v669_v24 = vpop.eup %668 }
 0x763   :  { %v262_v25 = vadd.f32 1.0, %v669_v24 }
 0x765   :  { %670 = vrcp.f32 %v262_v25  ;;  %v274_v31 = vand.u32 2147483648, %v262_v25  ;;  %vm268_vm14 = vweird.f32 %v262_v25  ;;  %v272_v32 = vand.u32 2147483647, %v262_v25 }
 0x767   :  { %v275_v34 = vor.u32 1.1754944e-38, %v274_v31  ;;  %vm273_vm0 = vcmp.eq.f32.partialorder %v272_v32, 8.507059e+37 }
 0x76b   :  { %v671_v26 = vpop.eup %670 }
 0x76c   :  { %v264_v27 = vmul.f32 %v671_v26, %v262_v25  ;;  %vm269_vm13 = vweird.f32 %v671_v26 }
 0x76d   :  { %vm270_vm15 = vmor %vm268_vm14, %vm269_vm13 }
 0x76e   :  { %v265_v28 = vsub.f32 1.0, %v264_v27 }
 0x770   :  { %v266_v29 = vmul.f32 %v671_v26, %v265_v28 }
 0x772   :  { %v267_v30 = vadd.f32 %v671_v26, %v266_v29 }
 0x774   :  { %v271_v33 = vsel %vm270_vm15, %v671_v26, %v267_v30 }
 0x775   :  { %v276_v36 = vsel %vm273_vm0, %v275_v34, %v271_v33  ;;  %v427_v33 = vld [vmem:[#allocation2 + $0xc] sm:$0x3] }
 0x776   :  { %v279_v38 = vmul.f32 %v276_v36, %v224_v14 }
 0x7d3   :  { %v282_v35 = vpop.permute.xlu0 %281 }
 0x7d4   :  { %v284_v37 = vmul.f32 %v282_v35, %v276_v36 }
 0x7d6   :  { %286 = vrot.lane.b32.xlu1 %v284_v37, %s763_s20 }
 0x848   :  { %v287_v39 = vpop.permute.xlu1 %286 }
 0x849   :  { %v289_v40 = vadd.f32 %v287_v39, %v279_v38 }
 0x84b   :  { %672 = vtanh.f32 %v289_v40 }
 0x851   :  { %v673_v41 = vpop.eup %672 }
 0x852   :  { %292 = vrot.lane.b32.xlu2 %v673_v41, %s766_s1 }
 0x8ac   :  { %v293_v42 = vpop.permute.xlu2 %292 }
 0x8ad   :  { %v295_v43 = vmul.f32 %v293_v42, %v276_v36 }
 0x8af   :  { %299 = vrot.lane.b32.xlu0 %v295_v43, %s763_s20 }
 0x921   :  { %v300_v44 = vpop.permute.xlu0 %299 }
 0x922   :  { %626 = vmatmul.msk.f32.vlgmr.msrb.gmra.mxu0 %vm39_vm4, %v300_v44 }
 0x99f   :  { %v320_v46 = vpop.f32.mrf.mxu0 }
 0x9a0   :  { %v323_v47 = vadd.f32 %v320_v46, %v297_v45 }
 0x9a2   :  { %674 = vtanh.f32 %v323_v47  ;;  %v627_v49 = vmul.f32 -1.442695, %v323_v47 }
 0x9a4   :  { %676 = vpow2.f32 %v627_v49 }
 0x9a8   :  { %v675_v48 = vpop.eup %674 }
 0x9a9   :  { %346 = vrot.lane.b32.xlu1 %v675_v48, %s766_s1 }
 0x9aa   :  { %v677_v50 = vpop.eup %676 }
 0x9ab   :  { %v327_v51 = vadd.f32 1.0, %v677_v50 }
 0x9ad   :  { %678 = vrcp.f32 %v327_v51  ;;  %v339_v57 = vand.u32 2147483648, %v327_v51  ;;  %vm333_vm2 = vweird.f32 %v327_v51  ;;  %v337_v58 = vand.u32 2147483647, %v327_v51 }
 0x9af   :  { %v340_v60 = vor.u32 1.1754944e-38, %v339_v57  ;;  %vm338_vm5 = vcmp.eq.f32.partialorder %v337_v58, 8.507059e+37 }
 0x9b3   :  { %v679_v52 = vpop.eup %678 }
 0x9b4   :  { %v329_v53 = vmul.f32 %v679_v52, %v327_v51  ;;  %vm334_vm1 = vweird.f32 %v679_v52 }
 0x9b5   :  { %vm335_vm3 = vmor %vm333_vm2, %vm334_vm1  ;;  %vm589_vm2 = vcmask 17408  }
 0x9b6   :  { %v330_v54 = vsub.f32 1.0, %v329_v53 }
 0x9b8   :  { %v331_v55 = vmul.f32 %v679_v52, %v330_v54 }
 0x9ba   :  { %v332_v56 = vadd.f32 %v679_v52, %v331_v55 }
 0x9bc   :  { %v336_v59 = vsel %vm335_vm3, %v679_v52, %v332_v56 }
 0x9bd   :  { %v341_v62 = vsel %vm338_vm5, %v340_v60, %v336_v59  ;;  %v492_v59 = vld [vmem:[#allocation2 + $0xe] sm:$0x3] }
 0x9be   :  { %v344_v0 = vmul.f32 %v341_v62, %v289_v40 }
 0xa1b   :  { %v347_v61 = vpop.permute.xlu1 %346 }
 0xa1c   :  { %v349_v63 = vmul.f32 %v347_v61, %v341_v62 }
 0xa1e   :  { %351 = vrot.lane.b32.xlu2 %v349_v63, %s763_s20 }
 0xa78   :  { %v352_v1 = vpop.permute.xlu2 %351 }
 0xa79   :  { %v354_v2 = vadd.f32 %v352_v1, %v344_v0 }
 0xa7b   :  { %680 = vtanh.f32 %v354_v2 }
 0xa81   :  { %v681_v3 = vpop.eup %680 }
 0xa82   :  { %357 = vrot.lane.b32.xlu0 %v681_v3, %s766_s1 }
 0xaf4   :  { %v358_v4 = vpop.permute.xlu0 %357 }
 0xaf5   :  { %v360_v5 = vmul.f32 %v358_v4, %v341_v62 }
 0xaf7   :  { %364 = vrot.lane.b32.xlu1 %v360_v5, %s763_s20 }
 0xb69   :  { %v365_v6 = vpop.permute.xlu1 %364 }
 0xb6a   :  { %628 = vmatmul.msk.f32.vlgmr.msrb.gmra.mxu1 %vm39_vm4, %v365_v6 }
 0xbe7   :  { %v385_v8 = vpop.f32.mrf.mxu1 }
 0xbe8   :  { %v388_v9 = vadd.f32 %v385_v8, %v362_v7 }
 0xbea   :  { %682 = vtanh.f32 %v388_v9  ;;  %v629_v11 = vmul.f32 -1.442695, %v388_v9 }
 0xbec   :  { %684 = vpow2.f32 %v629_v11 }
 0xbf0   :  { %v683_v10 = vpop.eup %682 }
 0xbf1   :  { %411 = vrot.lane.b32.xlu2 %v683_v10, %s766_s1 }
 0xbf2   :  { %v685_v12 = vpop.eup %684 }
 0xbf3   :  { %v392_v13 = vadd.f32 1.0, %v685_v12 }
 0xbf5   :  { %686 = vrcp.f32 %v392_v13  ;;  %v404_v19 = vand.u32 2147483648, %v392_v13  ;;  %vm398_vm7 = vweird.f32 %v392_v13  ;;  %v402_v20 = vand.u32 2147483647, %v392_v13 }
 0xbf7   :  { %v405_v22 = vor.u32 1.1754944e-38, %v404_v19  ;;  %vm403_vm9 = vcmp.eq.f32.partialorder %v402_v20, 8.507059e+37  ;;  %v558_v19 = vld [vmem:[%s873_s2 + $0x10] sm:$0xff]  ;;  %v557_v20 = vld [vmem:[%s873_s2 + $0x8] sm:$0xff] }
 0xbfb   :  { %v687_v14 = vpop.eup %686 }
 0xbfc   :  { %v394_v15 = vmul.f32 %v687_v14, %v392_v13  ;;  %vm399_vm6 = vweird.f32 %v687_v14 }
 0xbfd   :  { %vm400_vm8 = vmor %vm398_vm7, %vm399_vm6 }
 0xbfe   :  { %v395_v16 = vsub.f32 1.0, %v394_v15 }
 0xc00   :  { %v396_v17 = vmul.f32 %v687_v14, %v395_v16 }
 0xc02   :  { %v397_v18 = vadd.f32 %v687_v14, %v396_v17 }
 0xc04   :  { %v401_v21 = vsel %vm400_vm8, %v687_v14, %v397_v18  ;;  %v559_v18 = vld [vmem:[%s873_s2 + $0x18] sm:$0xff] }
 0xc05   :  { %v406_v24 = vsel %vm403_vm9, %v405_v22, %v401_v21  ;;  %581 = vmatpush.msra.mxu0 %v559_v18  ;;  %v556_v21 = vld [vmem:[%s873_s2] sm:$0xff]  ;;  %s767_s2 = smov [#allocation5]  }
 0xc06   :  { %v409_v26 = vmul.f32 %v406_v24, %v354_v2  ;;  %s607_s13 = sshll.u32 %s767_s2, 4  ;;  %s608_s13 = int_to_ptr.vmem [resolvable:$true] %s607_s13 }
 0xc07   :  { %582 = vmatpush.msra.mxu0 %v558_v19 }
 0xc09   :  { %583 = vmatpush.msra.mxu0 %v557_v20 }
 0xc0b   :  { %584 = vmatpush.msra.mxu0 %v556_v21 }
 0xc4b   :  { %v412_v23 = vpop.permute.xlu2 %411 }
 0xc4c   :  { %v414_v25 = vmul.f32 %v412_v23, %v406_v24 }
 0xc4e   :  { %416 = vrot.lane.b32.xlu0 %v414_v25, %s763_s20  ;;  %v641_v25 = vld [vmem:[%s874_s3] ss:$0 sm:$0xff] }
 0xcc0   :  { %v417_v27 = vpop.permute.xlu0 %416 }
 0xcc1   :  { %v419_v28 = vadd.f32 %v417_v27, %v409_v26 }
 0xcc3   :  { %688 = vtanh.f32 %v419_v28 }
 0xcc9   :  { %v689_v29 = vpop.eup %688 }
 0xcca   :  { %422 = vrot.lane.b32.xlu1 %v689_v29, %s766_s1 }
 0xd3c   :  { %v423_v30 = vpop.permute.xlu1 %422 }
 0xd3d   :  { %v425_v31 = vmul.f32 %v423_v30, %v406_v24 }
 0xd3f   :  { %429 = vrot.lane.b32.xlu2 %v425_v31, %s763_s20 }
 0xd99   :  { %v430_v32 = vpop.permute.xlu2 %429 }
 0xd9a   :  { %630 = vmatmul.msk.f32.vlgmr.msrb.gmra.mxu2 %vm39_vm4, %v430_v32 }
 0xe1d   :  { %v450_v34 = vpop.f32.mrf.mxu2 }
 0xe1e   :  { %v453_v35 = vadd.f32 %v450_v34, %v427_v33 }
 0xe20   :  { %690 = vtanh.f32 %v453_v35  ;;  %v631_v37 = vmul.f32 -1.442695, %v453_v35 }
 0xe22   :  { %692 = vpow2.f32 %v631_v37 }
 0xe26   :  { %v691_v36 = vpop.eup %690 }
 0xe27   :  { %476 = vrot.lane.b32.xlu0 %v691_v36, %s766_s1 }
 0xe28   :  { %v693_v38 = vpop.eup %692 }
 0xe29   :  { %v457_v39 = vadd.f32 1.0, %v693_v38 }
 0xe2b   :  { %694 = vrcp.f32 %v457_v39  ;;  %v469_v45 = vand.u32 2147483648, %v457_v39  ;;  %vm463_vm11 = vweird.f32 %v457_v39  ;;  %v467_v46 = vand.u32 2147483647, %v457_v39 }
 0xe2d   :  { %v470_v48 = vor.u32 1.1754944e-38, %v469_v45  ;;  %vm468_vm13 = vcmp.eq.f32.partialorder %v467_v46, 8.507059e+37 }
 0xe31   :  { %v695_v40 = vpop.eup %694 }
 0xe32   :  { %v459_v41 = vmul.f32 %v695_v40, %v457_v39  ;;  %vm464_vm10 = vweird.f32 %v695_v40 }
 0xe33   :  { %vm465_vm12 = vmor %vm463_vm11, %vm464_vm10 }
 0xe34   :  { %v460_v42 = vsub.f32 1.0, %v459_v41 }
 0xe36   :  { %v461_v43 = vmul.f32 %v695_v40, %v460_v42 }
 0xe38   :  { %v462_v44 = vadd.f32 %v695_v40, %v461_v43 }
 0xe3a   :  { %v466_v47 = vsel %vm465_vm12, %v695_v40, %v462_v44 }
 0xe3b   :  { %v471_v50 = vsel %vm468_vm13, %v470_v48, %v466_v47 }
 0xe3c   :  { %v474_v52 = vmul.f32 %v471_v50, %v419_v28 }
 0xe99   :  { %v477_v49 = vpop.permute.xlu0 %476 }
 0xe9a   :  { %v479_v51 = vmul.f32 %v477_v49, %v471_v50 }
 0xe9c   :  { %481 = vrot.lane.b32.xlu1 %v479_v51, %s763_s20 }
 0xf0e   :  { %v482_v53 = vpop.permute.xlu1 %481 }
 0xf0f   :  { %v484_v54 = vadd.f32 %v482_v53, %v474_v52 }
 0xf11   :  { %696 = vtanh.f32 %v484_v54 }
 0xf17   :  { %v697_v55 = vpop.eup %696 }
 0xf18   :  { %487 = vrot.lane.b32.xlu2 %v697_v55, %s766_s1 }
 0xf72   :  { %v488_v56 = vpop.permute.xlu2 %487 }
 0xf73   :  { %v490_v57 = vmul.f32 %v488_v56, %v471_v50 }
 0xf75   :  { %494 = vrot.lane.b32.xlu0 %v490_v57, %s763_s20 }
 0xfe7   :  { %v495_v58 = vpop.permute.xlu0 %494 }
 0xfe8   :  { %632 = vmatmul.msk.f32.vlgmr.msrb.gmra.mxu3 %vm39_vm4, %v495_v58 }
0x106b   :  { %v515_v60 = vpop.f32.mrf.mxu3 }
0x106c   :  { %v518_v61 = vadd.f32 %v515_v60, %v492_v59 }
0x106e   :  { %698 = vtanh.f32 %v518_v61  ;;  %v633_v63 = vmul.f32 -1.442695, %v518_v61 }
0x1070   :  { %700 = vpow2.f32 %v633_v63 }
0x1074   :  { %v699_v62 = vpop.eup %698 }
0x1075   :  { %541 = vrot.lane.b32.xlu1 %v699_v62, %s766_s1 }
0x1076   :  { %v701_v0 = vpop.eup %700 }
0x1077   :  { %v522_v1 = vadd.f32 1.0, %v701_v0 }
0x1079   :  { %702 = vrcp.f32 %v522_v1  ;;  %v534_v7 = vand.u32 2147483648, %v522_v1  ;;  %vm528_vm15 = vweird.f32 %v522_v1  ;;  %v532_v8 = vand.u32 2147483647, %v522_v1 }
0x107b   :  { %v535_v10 = vor.u32 1.1754944e-38, %v534_v7  ;;  %vm533_vm1 = vcmp.eq.f32.partialorder %v532_v8, 8.507059e+37 }
0x107f   :  { %v703_v2 = vpop.eup %702 }
0x1080   :  { %v524_v3 = vmul.f32 %v703_v2, %v522_v1  ;;  %vm529_vm14 = vweird.f32 %v703_v2 }
0x1081   :  { %vm530_vm0 = vmor %vm528_vm15, %vm529_vm14 }
0x1082   :  { %v525_v4 = vsub.f32 1.0, %v524_v3 }
0x1084   :  { %v526_v5 = vmul.f32 %v703_v2, %v525_v4 }
0x1086   :  { %v527_v6 = vadd.f32 %v703_v2, %v526_v5 }
0x1088   :  { %v531_v9 = vsel %vm530_vm0, %v703_v2, %v527_v6 }
0x1089   :  { %v536_v12 = vsel %vm533_vm1, %v535_v10, %v531_v9 }
0x108a   :  { %v539_v14 = vmul.f32 %v536_v12, %v484_v54 }
0x10e7   :  { %v542_v11 = vpop.permute.xlu1 %541 }
0x10e8   :  { %v544_v13 = vmul.f32 %v542_v11, %v536_v12 }
0x10ea   :  { %546 = vrot.lane.b32.xlu2 %v544_v13, %s763_s20 }
0x1144   :  { %v547_v15 = vpop.permute.xlu2 %546 }
0x1145   :  { %v549_v16 = vadd.f32 %v547_v15, %v539_v14 }
0x1147   :  { %704 = vtanh.f32 %v549_v16 }
0x114d   :  { %v705_v17 = vpop.eup %704 }
0x114e   :  { %552 = vrot.lane.b32.xlu0 %v705_v17, %s766_s1 }
0x11c0   :  { %v553_v22 = vpop.permute.xlu0 %552 }
0x11c1   :  { %v555_v23 = vmul.f32 %v553_v22, %v536_v12 }
0x11c3   :  { %565 = vrot.lane.b32.xlu1 %v555_v23, %s763_s20 }
0x1235   :  { %v566_v24 = vpop.permute.xlu1 %565 }
0x1236   :  { %634 = vmatmul.msk.f32.vlgmr.msra.gmra.mxu0 %vm39_vm4, %v566_v24 }
0x12b3   :  { %v586_v26 = vpop.f32.mrf.mxu0 }
0x12b4   :  { %v587_v27 = vadd.f32 %v641_v25, %v586_v26 }
0x12b6   :  { %v590_v28 = vsel %vm589_vm2, %v587_v27, -inf }
0x12b7   :  { %591 = vmax.xlane.f32.xlu2 %v590_v28 }
0x132a   :  { %v592_v29 = vpop.xlane.xlu2 %591 }
0x132b   :  { %v593_v30 = vsub.f32 %v587_v27, %v592_v29 }
0x132d   :  { %v594_v31 = vmul.f32 1.442695, %v593_v30 }
0x132f   :  { %706 = vpow2.f32 %v594_v31 }
0x1335   :  { %v707_v32 = vpop.eup %706 }
0x1336   :  { %v596_v33 = vsel %vm589_vm2, %v707_v32, 0.0 }
0x1337   :  { %597 = vadd.xlane.f32.xlu0 %v596_v33 }
0x13aa   :  { %v598_v34 = vpop.xlane.xlu0 %597 }
0x13ab   :  { %708 = vrcp.f32 %v598_v34 }
0x13b1   :  { %v709_v35 = vpop.eup %708 }
0x13b2   :  { %v600_v36 = vmul.f32 %v709_v35, %v707_v32 }
0x13b4   :  { %601 = vst.msk [vmem:[#allocation5] sm:$0x3] %vm589_vm2, %v600_v36 }
0x13b5   :  { %612 = dma.vmem_to_hbm [thread:$0]  %s608_s13, 32, %s610_s15, [#allocation4]  }
0x13b6   :  { %760 = dma.done.wait [#allocation4], 32  }
0x13b7   :  { %761 = vsyncadd [#allocation4], 4294967264 }
0x13b8   :  { %617 = vsyncpa [#allocation3], 1 }
0x13b9   :  { %618 = vsyncpa [#allocation4], 1 }

</bundles_post_ra>
